<compile_context>
chip_gen: v7x
topology: tpu7x:2x2x1
jax: 0.10.0
libtpu: 0.0.40
codegen_flags: <defaults>
</compile_context>

<pallas_src>
import math

import jax
import jax.numpy as jnp
from jax.experimental import pallas as pl
from jax.experimental.pallas import tpu as pltpu


def hmlstm_cell_kernel(xh_ref, w_ref, b_ref, h0_ref, c0_ref, z_ref,
                       h1_ref, c1_ref):
    """One TopHMLSTMCell step on a (tile_b, tile_h) output tile.

    xh_ref : (tile_b, K)        bf16, K = input_size + hidden_size, [x | h0]
    w_ref  : (4, K, tile_h)     bf16, gate-major fused weights [W_ih ; W_hh]
    b_ref  : (4, 1, tile_h)     f32 bias, gate-major
    h0_ref : (tile_b, tile_h)   previous hidden state
    c0_ref : (tile_b, tile_h)   previous cell state
    z_ref  : (tile_b, 1)        boundary variable from the layer below
    h1_ref : (tile_b, tile_h)   next hidden state (output)
    c1_ref : (tile_b, tile_h)   next cell state (output)
    """
    xh = xh_ref[...]                                    # bf16 (tile_b, K)
    h0 = h0_ref[...].astype(jnp.float32)
    c0 = c0_ref[...].astype(jnp.float32)

    def gate_preact(g):
        # bf16 x bf16 -> f32 accumulate on the MXU; each gate is a clean
        # lane-aligned (tile_b, tile_h) result (no in-vreg gate slicing).
        return (jnp.dot(xh, w_ref[g], preferred_element_type=jnp.float32)
                + b_ref[g])

    f = jax.nn.sigmoid(gate_preact(0))
    i = jax.nn.sigmoid(gate_preact(1))
    o = jax.nn.sigmoid(gate_preact(2))
    g = jnp.tanh(gate_preact(3))

    c1 = f * c0 + i * g
    h1 = o * jnp.tanh(c1)

    # Boundary gating (kept as a lerp so arbitrary z in [0, 1] keeps exact
    # module semantics, not just binary z).
    z = z_ref[...].astype(jnp.float32)                  # (tile_b, 1)
    c1 = z * c1 + (1.0 - z) * c0
    h1 = z * h1 + (1.0 - z) * h0

    h1_ref[...] = h1.astype(h1_ref.dtype)
    c1_ref[...] = c1.astype(c1_ref.dtype)


def _pick_tile(dim, target, align):
    """Largest divisor of `dim` that is a multiple of `align` and <= target,
    falling back to the full dimension (always legal as a block size)."""
    if dim <= target:
        return dim
    t = (target // align) * align
    while t >= align:
        if dim % t == 0:
            return t
        t -= align
    return dim


def top_hmlstm_cell(input_, h_0, c_0, weight_ih, weight_hh, bias, z_lm1,
                    *, compute_dtype=jnp.bfloat16):
    """Wrapper: layout prep + pallas_call. Returns (h_1, c_1)."""
    batch, hidden = h_0.shape
    input_size = input_.shape[1]
    k = input_size + hidden

    # Fold both matmuls into one: gates = [x | h0] @ [W_ih ; W_hh] + b.
    xh = jnp.concatenate([input_, h_0], axis=1).astype(compute_dtype)      # (B, K)
    w = jnp.concatenate([weight_ih, weight_hh], axis=0)                    # (K, 4H)
    # Gate-major layout: (4, K, H) so each gate's weights are a contiguous slab.
    w4 = jnp.transpose(w.reshape(k, 4, hidden), (1, 0, 2)).astype(compute_dtype)
    b4 = bias.reshape(4, 1, hidden).astype(jnp.float32)                    # (4, 1, H)
    z2 = z_lm1.reshape(batch, 1).astype(jnp.float32)                       # (B, 1)

    tile_b = _pick_tile(batch, 256, 8)      # sublane-aligned batch tiles
    tile_h = _pick_tile(hidden, 512, 128)   # lane-aligned hidden tiles
    nb = batch // tile_b
    nh = hidden // tile_h

    # Grid order: hidden tiles outer, batch tiles inner -> the weight block index
    # is constant across the inner axis, so W stays VMEM-resident while batch
    # tiles stream through.
    grid = (nh, nb)

    h_1, c_1 = pl.pallas_call(
        hmlstm_cell_kernel,
        out_shape=(
            jax.ShapeDtypeStruct((batch, hidden), h_0.dtype),
            jax.ShapeDtypeStruct((batch, hidden), c_0.dtype),
        ),
        grid=grid,
        in_specs=[
            pl.BlockSpec((tile_b, k), lambda j, i: (i, 0)),          # xh
            pl.BlockSpec((4, k, tile_h), lambda j, i: (0, 0, j)),    # w4 (resident over i)
            pl.BlockSpec((4, 1, tile_h), lambda j, i: (0, 0, j)),    # bias
            pl.BlockSpec((tile_b, tile_h), lambda j, i: (i, j)),     # h0
            pl.BlockSpec((tile_b, tile_h), lambda j, i: (i, j)),     # c0
            pl.BlockSpec((tile_b, 1), lambda j, i: (i, 0)),          # z
        ],
        out_specs=(
            pl.BlockSpec((tile_b, tile_h), lambda j, i: (i, j)),     # h1
            pl.BlockSpec((tile_b, tile_h), lambda j, i: (i, j)),     # c1
        ),
        compiler_params=pltpu.CompilerParams(
            # Both grid axes are independent -> megacore sharding on v7x.
            dimension_semantics=("parallel", "parallel"),
            # Above v5e's 16 MiB default scoped limit, under v7x's 64 MiB physical.
            vmem_limit_bytes=48 * 1024 * 1024,
        ),
    )(xh, w4, b4, h_0, c_0, z2)
    return h_1, c_1


def reference_f32(input_, h_0, c_0, weight_ih, weight_hh, bias, z_lm1):
    """Pure-JAX f32 reference mirroring the PyTorch forward exactly."""
    wh_b = h_0 @ weight_hh + bias[None, :]
    wi = input_ @ weight_ih
    gates = wh_b + wi
    f, i, o, g = jnp.split(gates, 4, axis=1)
    c_1 = jax.nn.sigmoid(f) * c_0 + jax.nn.sigmoid(i) * jnp.tanh(g)
    h_1 = jax.nn.sigmoid(o) * jnp.tanh(c_1)
    z = z_lm1[:, None]
    c_1 = z * c_1 + (1 - z) * c_0
    h_1 = z * h_1 + (1 - z) * h_0
    return h_1, c_1


def reference_bf16_matmul(input_, h_0, c_0, weight_ih, weight_hh, bias, z_lm1):
    """Same math as the kernel: bf16 matmul operands, f32 accumulation / gating."""
    xh = jnp.concatenate([input_, h_0], axis=1).astype(jnp.bfloat16)
    w = jnp.concatenate([weight_ih, weight_hh], axis=0).astype(jnp.bfloat16)
    gates = jnp.dot(xh, w, preferred_element_type=jnp.float32) + bias[None, :]
    f, i, o, g = jnp.split(gates, 4, axis=1)
    c_1 = jax.nn.sigmoid(f) * c_0 + jax.nn.sigmoid(i) * jnp.tanh(g)
    h_1 = jax.nn.sigmoid(o) * jnp.tanh(c_1)
    z = z_lm1[:, None]
    c_1 = z * c_1 + (1 - z) * c_0
    h_1 = z * h_1 + (1 - z) * h_0
    return h_1, c_1


if __name__ == "__main__":
    batch = 8
    input_size = 16
    hidden_size = 32

    key = jax.random.PRNGKey(0)
    k_x, k_h, k_c, k_wih, k_whh, k_z = jax.random.split(key, 6)

    # Deterministic parameter init mirroring reset_parameters():
    # uniform(-stdv, stdv) for weights, bias = 0.
    stdv = 1.0 / math.sqrt(hidden_size)
    weight_ih = jax.random.uniform(
        k_wih, (input_size, 4 * hidden_size), jnp.float32, -stdv, stdv)
    weight_hh = jax.random.uniform(
        k_whh, (hidden_size, 4 * hidden_size), jnp.float32, -stdv, stdv)
    bias = jnp.zeros((4 * hidden_size,), jnp.float32)

    # Example inputs.
    input_ = jax.random.normal(k_x, (batch, input_size), jnp.float32)
    h_0 = jax.random.normal(k_h, (batch, hidden_size), jnp.float32)
    c_0 = jax.random.normal(k_c, (batch, hidden_size), jnp.float32)
    # Boundary variable in {0, 1}.
    z_lm1 = jax.random.bernoulli(k_z, 0.5, (batch,)).astype(jnp.float32)

    h_1, c_1 = top_hmlstm_cell(input_, h_0, c_0, weight_ih, weight_hh, bias,
                               z_lm1)
    jax.block_until_ready((h_1, c_1))

    # Tight check against a reference using the same bf16-operand / f32-accum matmul.
    h_rb, c_rb = reference_bf16_matmul(input_, h_0, c_0, weight_ih, weight_hh,
                                       bias, z_lm1)
    assert jnp.allclose(h_1, h_rb, atol=1e-4, rtol=1e-4)
    assert jnp.allclose(c_1, c_rb, atol=1e-4, rtol=1e-4)

    # Loose sanity check against the exact f32 PyTorch-equivalent reference
    # (difference is only bf16 rounding of the matmul operands).
    h_rf, c_rf = reference_f32(input_, h_0, c_0, weight_ih, weight_hh, bias,
                               z_lm1)
    assert jnp.allclose(h_1, h_rf, atol=1e-1, rtol=1e-1)
    assert jnp.allclose(c_1, c_rf, atol=1e-1, rtol=1e-1)

    print("KERNEL_OK")
</pallas_src>

<mosaic_0001>
module attributes {stable_mosaic.version = 11 : i64} {
  func.func @hmlstm_cell_kernel(%arg0: i32, %arg1: i32, %arg2: memref<8x48xbf16, #tpu.memory_space<vmem>>, %arg3: memref<4x48x32xbf16, #tpu.memory_space<vmem>>, %arg4: memref<4x1x32xf32, #tpu.memory_space<vmem>>, %arg5: memref<8x32xf32, #tpu.memory_space<vmem>>, %arg6: memref<8x32xf32, #tpu.memory_space<vmem>>, %arg7: memref<8x1xf32, #tpu.memory_space<vmem>>, %arg8: memref<8x32xf32, #tpu.memory_space<vmem>>, %arg9: memref<8x32xf32, #tpu.memory_space<vmem>>) attributes {dimension_semantics = [#tpu.dimension_semantics<parallel>, #tpu.dimension_semantics<parallel>], iteration_bounds = array<i64: 1, 1>, scalar_prefetch = 0 : i64, scratch_operands = 0 : i64, tpu.core_type = #tpu.core_type<tc>, window_params = [{transform_indices = @transform_0, window_bounds = array<i64: 8, 48>}, {transform_indices = @transform_1, window_bounds = array<i64: 4, 48, 32>}, {transform_indices = @transform_2, window_bounds = array<i64: 4, 1, 32>}, {transform_indices = @transform_3, window_bounds = array<i64: 8, 32>}, {transform_indices = @transform_4, window_bounds = array<i64: 8, 32>}, {transform_indices = @transform_5, window_bounds = array<i64: 8, 1>}, {transform_indices = @transform_6, window_bounds = array<i64: 8, 32>}, {transform_indices = @transform_7, window_bounds = array<i64: 8, 32>}]} {
    %c0 = arith.constant 0 : index
    %c0_0 = arith.constant 0 : index
    %0 = vector.load %arg2[%c0, %c0_0] : memref<8x48xbf16, #tpu.memory_space<vmem>>, vector<8x48xbf16>
    %c0_1 = arith.constant 0 : index
    %c0_2 = arith.constant 0 : index
    %1 = vector.load %arg5[%c0_1, %c0_2] : memref<8x32xf32, #tpu.memory_space<vmem>>, vector<8x32xf32>
    %c0_3 = arith.constant 0 : index
    %c0_4 = arith.constant 0 : index
    %2 = vector.load %arg6[%c0_3, %c0_4] : memref<8x32xf32, #tpu.memory_space<vmem>>, vector<8x32xf32>
    %c0_5 = arith.constant 0 : index
    %c0_6 = arith.constant 0 : index
    %c0_7 = arith.constant 0 : index
    %3 = vector.load %arg3[%c0_5, %c0_6, %c0_7] : memref<4x48x32xbf16, #tpu.memory_space<vmem>>, vector<1x48x32xbf16>
    %4 = vector.shape_cast %3 : vector<1x48x32xbf16> to vector<48x32xbf16>
    %cst = arith.constant dense<0.000000e+00> : vector<8x32xf32>
    %5 = tpu.matmul %0, %4, %cst {dimension_numbers = #tpu.dot_dimension_numbers<[1], [0], [0], [1], [0, 0, 1, 1], [], []>} : vector<8x48xbf16>, vector<48x32xbf16>, vector<8x32xf32> -> vector<8x32xf32>
    %c0_8 = arith.constant 0 : index
    %c0_9 = arith.constant 0 : index
    %c0_10 = arith.constant 0 : index
    %6 = vector.load %arg4[%c0_8, %c0_9, %c0_10] : memref<4x1x32xf32, #tpu.memory_space<vmem>>, vector<1x1x32xf32>
    %7 = vector.shape_cast %6 : vector<1x1x32xf32> to vector<1x32xf32>
    %8 = vector.broadcast %7 : vector<1x32xf32> to vector<8x32xf32>
    %9 = arith.addf %5, %8 : vector<8x32xf32>
    %10 = arith.negf %9 : vector<8x32xf32>
    %11 = math.exp %10 : vector<8x32xf32>
    %cst_11 = arith.constant 1.000000e+00 : f32
    %12 = vector.broadcast %cst_11 : f32 to vector<8x32xf32>
    %13 = arith.addf %12, %11 : vector<8x32xf32>
    %14 = arith.divf %12, %13 : vector<8x32xf32>
    %c1 = arith.constant 1 : index
    %c0_12 = arith.constant 0 : index
    %c0_13 = arith.constant 0 : index
    %15 = vector.load %arg3[%c1, %c0_12, %c0_13] : memref<4x48x32xbf16, #tpu.memory_space<vmem>>, vector<1x48x32xbf16>
    %16 = vector.shape_cast %15 : vector<1x48x32xbf16> to vector<48x32xbf16>
    %cst_14 = arith.constant dense<0.000000e+00> : vector<8x32xf32>
    %17 = tpu.matmul %0, %16, %cst_14 {dimension_numbers = #tpu.dot_dimension_numbers<[1], [0], [0], [1], [0, 0, 1, 1], [], []>} : vector<8x48xbf16>, vector<48x32xbf16>, vector<8x32xf32> -> vector<8x32xf32>
    %c1_15 = arith.constant 1 : index
    %c0_16 = arith.constant 0 : index
    %c0_17 = arith.constant 0 : index
    %18 = vector.load %arg4[%c1_15, %c0_16, %c0_17] : memref<4x1x32xf32, #tpu.memory_space<vmem>>, vector<1x1x32xf32>
    %19 = vector.shape_cast %18 : vector<1x1x32xf32> to vector<1x32xf32>
    %20 = vector.broadcast %19 : vector<1x32xf32> to vector<8x32xf32>
    %21 = arith.addf %17, %20 : vector<8x32xf32>
    %22 = arith.negf %21 : vector<8x32xf32>
    %23 = math.exp %22 : vector<8x32xf32>
    %cst_18 = arith.constant 1.000000e+00 : f32
    %24 = vector.broadcast %cst_18 : f32 to vector<8x32xf32>
    %25 = arith.addf %24, %23 : vector<8x32xf32>
    %26 = arith.divf %24, %25 : vector<8x32xf32>
    %c2 = arith.constant 2 : index
    %c0_19 = arith.constant 0 : index
    %c0_20 = arith.constant 0 : index
    %27 = vector.load %arg3[%c2, %c0_19, %c0_20] : memref<4x48x32xbf16, #tpu.memory_space<vmem>>, vector<1x48x32xbf16>
    %28 = vector.shape_cast %27 : vector<1x48x32xbf16> to vector<48x32xbf16>
    %cst_21 = arith.constant dense<0.000000e+00> : vector<8x32xf32>
    %29 = tpu.matmul %0, %28, %cst_21 {dimension_numbers = #tpu.dot_dimension_numbers<[1], [0], [0], [1], [0, 0, 1, 1], [], []>} : vector<8x48xbf16>, vector<48x32xbf16>, vector<8x32xf32> -> vector<8x32xf32>
    %c2_22 = arith.constant 2 : index
    %c0_23 = arith.constant 0 : index
    %c0_24 = arith.constant 0 : index
    %30 = vector.load %arg4[%c2_22, %c0_23, %c0_24] : memref<4x1x32xf32, #tpu.memory_space<vmem>>, vector<1x1x32xf32>
    %31 = vector.shape_cast %30 : vector<1x1x32xf32> to vector<1x32xf32>
    %32 = vector.broadcast %31 : vector<1x32xf32> to vector<8x32xf32>
    %33 = arith.addf %29, %32 : vector<8x32xf32>
    %34 = arith.negf %33 : vector<8x32xf32>
    %35 = math.exp %34 : vector<8x32xf32>
    %cst_25 = arith.constant 1.000000e+00 : f32
    %36 = vector.broadcast %cst_25 : f32 to vector<8x32xf32>
    %37 = arith.addf %36, %35 : vector<8x32xf32>
    %38 = arith.divf %36, %37 : vector<8x32xf32>
    %c3 = arith.constant 3 : index
    %c0_26 = arith.constant 0 : index
    %c0_27 = arith.constant 0 : index
    %39 = vector.load %arg3[%c3, %c0_26, %c0_27] : memref<4x48x32xbf16, #tpu.memory_space<vmem>>, vector<1x48x32xbf16>
    %40 = vector.shape_cast %39 : vector<1x48x32xbf16> to vector<48x32xbf16>
    %cst_28 = arith.constant dense<0.000000e+00> : vector<8x32xf32>
    %41 = tpu.matmul %0, %40, %cst_28 {dimension_numbers = #tpu.dot_dimension_numbers<[1], [0], [0], [1], [0, 0, 1, 1], [], []>} : vector<8x48xbf16>, vector<48x32xbf16>, vector<8x32xf32> -> vector<8x32xf32>
    %c3_29 = arith.constant 3 : index
    %c0_30 = arith.constant 0 : index
    %c0_31 = arith.constant 0 : index
    %42 = vector.load %arg4[%c3_29, %c0_30, %c0_31] : memref<4x1x32xf32, #tpu.memory_space<vmem>>, vector<1x1x32xf32>
    %43 = vector.shape_cast %42 : vector<1x1x32xf32> to vector<1x32xf32>
    %44 = vector.broadcast %43 : vector<1x32xf32> to vector<8x32xf32>
    %45 = arith.addf %41, %44 : vector<8x32xf32>
    %46 = math.tanh %45 : vector<8x32xf32>
    %47 = arith.mulf %14, %2 : vector<8x32xf32>
    %48 = arith.mulf %26, %46 : vector<8x32xf32>
    %49 = arith.addf %47, %48 : vector<8x32xf32>
    %50 = math.tanh %49 : vector<8x32xf32>
    %51 = arith.mulf %38, %50 : vector<8x32xf32>
    %c0_32 = arith.constant 0 : index
    %c0_33 = arith.constant 0 : index
    %52 = vector.load %arg7[%c0_32, %c0_33] : memref<8x1xf32, #tpu.memory_space<vmem>>, vector<8x1xf32>
    %53 = vector.broadcast %52 : vector<8x1xf32> to vector<8x32xf32>
    %54 = arith.mulf %53, %49 : vector<8x32xf32>
    %cst_34 = arith.constant 1.000000e+00 : f32
    %55 = vector.broadcast %cst_34 : f32 to vector<8x1xf32>
    %56 = arith.subf %55, %52 : vector<8x1xf32>
    %57 = vector.broadcast %56 : vector<8x1xf32> to vector<8x32xf32>
    %58 = arith.mulf %57, %2 : vector<8x32xf32>
    %59 = arith.addf %54, %58 : vector<8x32xf32>
    %60 = vector.broadcast %52 : vector<8x1xf32> to vector<8x32xf32>
    %61 = arith.mulf %60, %51 : vector<8x32xf32>
    %cst_35 = arith.constant 1.000000e+00 : f32
    %62 = vector.broadcast %cst_35 : f32 to vector<8x1xf32>
    %63 = arith.subf %62, %52 : vector<8x1xf32>
    %64 = vector.broadcast %63 : vector<8x1xf32> to vector<8x32xf32>
    %65 = arith.mulf %64, %1 : vector<8x32xf32>
    %66 = arith.addf %61, %65 : vector<8x32xf32>
    %c0_36 = arith.constant 0 : index
    %c0_37 = arith.constant 0 : index
    %67 = vector.load %arg8[%c0_36, %c0_37] : memref<8x32xf32, #tpu.memory_space<vmem>>, vector<8x32xf32>
    tpu.vector_store %arg8[%c0_36, %c0_37], %66 {strides = array<i32>} : memref<8x32xf32, #tpu.memory_space<vmem>>, vector<8x32xf32>,
    %c0_38 = arith.constant 0 : index
    %c0_39 = arith.constant 0 : index
    %68 = vector.load %arg9[%c0_38, %c0_39] : memref<8x32xf32, #tpu.memory_space<vmem>>, vector<8x32xf32>
    tpu.vector_store %arg9[%c0_38, %c0_39], %59 {strides = array<i32>} : memref<8x32xf32, #tpu.memory_space<vmem>>, vector<8x32xf32>,
    return
  }
  func.func @transform_0(%arg0: i32, %arg1: i32) -> (i32, i32) {
    %c0_i32 = arith.constant 0 : i32
    %c0_i32_0 = arith.constant 0 : i32
    return %arg1, %c0_i32 : i32, i32
  }
  func.func @transform_1(%arg0: i32, %arg1: i32) -> (i32, i32, i32) {
    %c0_i32 = arith.constant 0 : i32
    %c0_i32_0 = arith.constant 0 : i32
    %c0_i32_1 = arith.constant 0 : i32
    return %c0_i32, %c0_i32_0, %arg0 : i32, i32, i32
  }
  func.func @transform_2(%arg0: i32, %arg1: i32) -> (i32, i32, i32) {
    %c0_i32 = arith.constant 0 : i32
    %c0_i32_0 = arith.constant 0 : i32
    %c0_i32_1 = arith.constant 0 : i32
    return %c0_i32, %c0_i32_0, %arg0 : i32, i32, i32
  }
  func.func @transform_3(%arg0: i32, %arg1: i32) -> (i32, i32) {
    %c0_i32 = arith.constant 0 : i32
    return %arg1, %arg0 : i32, i32
  }
  func.func @transform_4(%arg0: i32, %arg1: i32) -> (i32, i32) {
    %c0_i32 = arith.constant 0 : i32
    return %arg1, %arg0 : i32, i32
  }
  func.func @transform_5(%arg0: i32, %arg1: i32) -> (i32, i32) {
    %c0_i32 = arith.constant 0 : i32
    %c0_i32_0 = arith.constant 0 : i32
    return %arg1, %c0_i32 : i32, i32
  }
  func.func @transform_6(%arg0: i32, %arg1: i32) -> (i32, i32) {
    %c0_i32 = arith.constant 0 : i32
    return %arg1, %arg0 : i32, i32
  }
  func.func @transform_7(%arg0: i32, %arg1: i32) -> (i32, i32) {
    %c0_i32 = arith.constant 0 : i32
    return %arg1, %arg0 : i32, i32
  }
}

</mosaic_0001>

<bundles_post_ra>
// kernel: tpu_custom_call.1
= control target key start
LH: loop header
LB: loop body
LE: loop exit
PB: predicated region body
PF: predicated region fallthrough
CT: control target
= control target key end

     0   :  { %13 = vsyncpa [#allocation3], 0  ;;  %v580_v1 = vmov 0.0   ;;  %vm581_vm0 = vmmov 0   ;;  %v582_v5 = vmov 0   ;;  %vm62_vm1 = vcmask 392192   ;;  %s719_s0 = inlined_call_operand.vmem [shape: bf16[8,48], index: 0, kind: input, shape index: {}]   ;;  %s720_s1 = inlined_call_operand.vmem [shape: bf16[4,48,32], index: 1, kind: input, shape index: {}]   ;;  %s721_s2 = inlined_call_operand.vmem [shape: f32[4,1,32], index: 2, kind: input, shape index: {}]   ;;  %s722_s3 = inlined_call_operand.vmem [shape: f32[8,32], index: 3, kind: input, shape index: {}]   ;;  %s723_s4 = inlined_call_operand.vmem [shape: f32[8,32], index: 4, kind: input, shape index: {}]   ;;  %s724_s5 = inlined_call_operand.vmem [shape: f32[8,1], index: 5, kind: input, shape index: {}]   ;;  %s725_s6 = inlined_call_operand.hbm [shape: f32[8,32], index: 6, kind: output, shape index: {0}]   ;;  %s726_s7 = inlined_call_operand.hbm [shape: f32[8,32], index: 7, kind: output, shape index: {1}]  }
   0x1   :  { %v504_v0 = vld [vmem:[%s720_s1] sm:$0xff]   ;;  %458 = vmatprep.subr.bf16.mxu0 %v580_v1  ;;  %468 = vmatprep.subr.bf16.mxu1 %v580_v1  ;;  %v505_v2 = vld [vmem:[%s720_s1 + $0x18] sm:$0xff]   ;;  %v506_v3 = vld [vmem:[%s720_s1 + $0x8] sm:$0xff]  }
   0x2   :  { %459 = vmatpush3.bf16.msra.mxu0 %v504_v0  ;;  %464 = vmatprep.mubr.msk.bf16.mxu0 %vm581_vm0, %v580_v1  ;;  %v507_v4 = vld [vmem:[%s720_s1 + $0x20] sm:$0xff]   ;;  %v508_v6 = vld [vmem:[%s720_s1 + $0x10] sm:$0xff]   ;;  %v509_v7 = vld [vmem:[%s720_s1 + $0x28] sm:$0xff]  }
   0x3   :  { %469 = vmatpush3.bf16.msra.mxu1 %v505_v2  ;;  %460 = vmatprep.subr.bf16.mxu0 %v580_v1  ;;  %v28_v8 = vld [vmem:[%s719_s0] sm:$0xf]  ;;  %v510_v9 = vld [vmem:[%s720_s1 + $0x30] sm:$0xff]   ;;  %v511_v10 = vld [vmem:[%s720_s1 + $0x48] sm:$0xff]  }
   0x4   :  { %470 = vmatprep.subr.bf16.mxu1 %v580_v1  ;;  %474 = vmatprep.mubr.msk.bf16.mxu1 %vm581_vm0, %v580_v1  ;;  %v349_v11 = vld [vmem:[%s724_s5] sm:$0xff] }
   0x5   :  { %503 = vset.pattern.permute.xlu0 %v582_v5  ;;  %v356_v12 = vsub.f32 1.0, %v349_v11 }
   0x6   :  { %461 = vmatpush3.bf16.msra.mxu0 %v506_v3  ;;  %352 = vperm.xlu0 %503, %v349_v11  }
   0x7   :  { %471 = vmatpush3.bf16.msra.mxu1 %v507_v4  ;;  %462 = vmatprep.subr.bf16.mxu0 %v580_v1 }
   0x8   :  { %472 = vmatprep.subr.bf16.mxu1 %v580_v1 }
   0xa   :  { %463 = vmatpush3.bf16.msra.mxu0 %v508_v6 }
   0xb   :  { %473 = vmatpush3.bf16.msra.mxu1 %v509_v7  ;;  %478 = vmatprep.subr.bf16.mxu0 %v580_v1 }
   0xc   :  { %488 = vmatprep.subr.bf16.mxu1 %v580_v1 }
   0xd   :  { %465 = vmatmul.mubr.msk.bf16.vlgmr.msra.gmra.mrb[0].mxu0 %vm62_vm1, %v28_v8 }
   0xe   :  { %14 = vsyncpa [#allocation5], 0  ;;  %475 = vmatmul.mubr.msk.bf16.vlgmr.msra.gmra.mrb[0].mxu1 %vm62_vm1, %v28_v8  ;;  %479 = vmatpush3.bf16.msra.mxu0 %v510_v9  ;;  %v512_v13 = vld [vmem:[%s720_s1 + $0x38] sm:$0xff]   ;;  %v513_v14 = vld [vmem:[%s720_s1 + $0x50] sm:$0xff]   ;;  %s583_s12 = smov [#allocation4]   ;;  %vm367_vm2 = vcmask 261120  }
   0xf   :  { %489 = vmatpush3.bf16.msra.mxu1 %v511_v10  ;;  %480 = vmatprep.subr.bf16.mxu0 %v580_v1  ;;  %v514_v15 = vld [vmem:[%s720_s1 + $0x40] sm:$0xff]   ;;  %v515_v16 = vld [vmem:[%s720_s1 + $0x58] sm:$0xff]   ;;  %s386_s13 = sshll.u32 %s583_s12, 4  ;;  %s387_s13 = int_to_ptr.vmem [resolvable:$true] %s386_s13 }
  0x10   :  { %490 = vmatprep.subr.bf16.mxu1 %v580_v1  ;;  %484 = vmatprep.mubr.msk.bf16.mxu0 %vm581_vm0, %v580_v1  ;;  %v398_v17 = vld [vmem:[%s721_s2] ss:$0 sm:$0xff]  ;;  %v411_v18 = vld [vmem:[%s721_s2 + $0x1] ss:$0 sm:$0xff]  ;;  %v424_v31 = vld [vmem:[%s721_s2 + $0x2] ss:$0 sm:$0xff]  ;;  %p537_p1 = scmp.lt.s32.totalorder %s387_s13, %s387_s13 }
  0x11   :  { %494 = vmatprep.mubr.msk.bf16.mxu1 %vm581_vm0, %v580_v1  ;;  %359 = vperm.xlu0 %503, %v356_v12   ;;  %v437_v32 = vld [vmem:[%s721_s2 + $0x3] ss:$0 sm:$0xff] }
  0x12   :  { %481 = vmatpush3.bf16.msra.mxu0 %v512_v13  ;;  %v30_v50 = vld [vmem:[%s723_s4] sm:$0xff]  ;;  %s532_s4 = scalar_lea.vmem %s387_s13, 128 }
  0x13   :  { %491 = vmatpush3.bf16.msra.mxu1 %v513_v14  ;;  %482 = vmatprep.subr.bf16.mxu0 %v580_v1  ;;  %p533_p0 = scmp.ne.s32.totalorder %s387_s13, %s532_s4  ;;  %p538_p2 = scmp.lt.s32.totalorder %s532_s4, %s532_s4 }
  0x14   :  { %492 = vmatprep.subr.bf16.mxu1 %v580_v1 }
  0x15   :  { %p539_p3 = por %p538_p2, %p537_p1 }
  0x16   :  { %483 = vmatpush3.bf16.msra.mxu0 %v514_v15 }
  0x17   :  { %493 = vmatpush3.bf16.msra.mxu1 %v515_v16  ;;  %p540_p4 = pnand %p539_p3, %p533_p0 }
  0x19   :  { %485 = vmatmul.mubr.msk.bf16.vlgmr.msra.gmra.mrb[4].mxu0 %vm62_vm1, %v28_v8 }
  0x1a   :  { %495 = vmatmul.mubr.msk.bf16.vlgmr.msra.gmra.mrb[4].mxu1 %vm62_vm1, %v28_v8 }
  0x85   :  { %v353_v48 = vpop.permute.xlu0 %352 }
  0x90   :  { %v360_v55 = vpop.permute.xlu0 %359 }
  0x91   :  { %v362_v59 = vmul.f32 %v360_v55, %v30_v50 }
  0xe0   :  { %v100_v19 = vpop.f32.mrb[0].mxu0 }
  0xe1   :  { %v101_v20 = vadd.f32 %v398_v17, %v100_v19  ;;  %v179_v21 = vpop.f32.mrb[0].mxu1  ;;  %v466_v22 = vpop.f32.mrb[1].mxu0 }
  0xe2   :  { %v180_v23 = vadd.f32 %v411_v18, %v179_v21  ;;  %v476_v24 = vpop.f32.mrb[1].mxu1  ;;  %v103_v25 = vpop.f32.mrb[2].mxu0 }
  0xe3   :  { %v403_v26 = vmul.f32 -1.442695, %v101_v20  ;;  %v182_v27 = vpop.f32.mrb[2].mxu1  ;;  %v467_v28 = vpop.f32.mrb[3].mxu0 }
  0xe4   :  { %v416_v29 = vmul.f32 -1.442695, %v180_v23  ;;  %v477_v30 = vpop.f32.mrb[3].mxu1 }
  0xe5   :  { %516 = vpow2.f32 %v403_v26 }
  0xe6   :  { %518 = vpow2.f32 %v416_v29 }
  0xec   :  { %v258_v33 = vpop.f32.mrb[4].mxu0 }
  0xed   :  { %v259_v34 = vadd.f32 %v424_v31, %v258_v33  ;;  %v337_v35 = vpop.f32.mrb[4].mxu1  ;;  %v486_v36 = vpop.f32.mrb[5].mxu0 }
  0xee   :  { %v338_v37 = vadd.f32 %v437_v32, %v337_v35  ;;  %v496_v38 = vpop.f32.mrb[5].mxu1  ;;  %v261_v39 = vpop.f32.mrb[6].mxu0 }
  0xef   :  { %v517_v40 = vpop.eup %516  ;;  %v429_v41 = vmul.f32 -1.442695, %v259_v34  ;;  %v340_v42 = vpop.f32.mrb[6].mxu1 }
  0xf0   :  { %v487_v43 = vpop.f32.mrb[7].mxu0  ;;  %v519_v44 = vpop.eup %518  ;;  %v109_v45 = vadd.f32 1.0, %v517_v40  ;;  %520 = vtanh.f32 %v338_v37 }
  0xf1   :  { %v497_v46 = vpop.f32.mrb[7].mxu1  ;;  %v188_v47 = vadd.f32 1.0, %v519_v44  ;;  %522 = vpow2.f32 %v429_v41 }
  0xf2   :  { %524 = vrcp.f32 %v109_v45 }
  0xf3   :  { %526 = vrcp.f32 %v188_v47 }
  0xfa   :  { %v521_v49 = vpop.eup %520 }
  0xfb   :  { %v523_v51 = vpop.eup %522 }
  0xfc   :  { %v525_v52 = vpop.eup %524  ;;  %v267_v53 = vadd.f32 1.0, %v523_v51 }
  0xfd   :  { %v527_v54 = vpop.eup %526  ;;  %v344_v56 = vmul.f32 %v525_v52, %v30_v50 }
  0xfe   :  { %v345_v57 = vmul.f32 %v527_v54, %v521_v49  ;;  %528 = vrcp.f32 %v267_v53 }
 0x100   :  { %v346_v58 = vadd.f32 %v345_v57, %v344_v56 }
 0x102   :  { %530 = vtanh.f32 %v346_v58  ;;  %v355_v60 = vmul.f32 %v353_v48, %v346_v58 }
 0x104   :  { %v363_v61 = vadd.f32 %v362_v59, %v355_v60 }
 0x106   :  { %369 = vst.msk [vmem:[#allocation4] sm:$0xff] %vm367_vm2, %v363_v61 }
 0x107   :  { %543 = shalt.err (!%p540_p4)
}
 0x108   :  { %s544_s16 = scalar_lea.hbm %s726_s7, 128 }
 0x109   :  { %p545_p5 = scmp.ne.s32.totalorder %s726_s7, %s544_s16  ;;  %p548_p6 = scmp.lt.u32.totalorder %s544_s16, %s726_s7 }
 0x10b   :  { %p550_p7 = pnand %p548_p6, %p545_p5 }
 0x10d   :  { %553 = shalt.err (!%p550_p7)
}
 0x10e   :  { %389 = dma.vmem_to_hbm [thread:$0]  %s387_s13, 128, %s726_s7, [#allocation5]   ;;  %v529_v62 = vpop.eup %528  ;;  %v29_v0 = vld [vmem:[%s722_s3] sm:$0xff] }
 0x10f   :  { %v531_v63 = vpop.eup %530  ;;  %s584_s5 = smov [#allocation2]   ;;  %v365_v2 = vmul.f32 %v360_v55, %v29_v0 }
 0x110   :  { %v348_v1 = vmul.f32 %v531_v63, %v529_v62  ;;  %s376_s24 = sshll.u32 %s584_s5, 4  ;;  %s377_s24 = int_to_ptr.vmem [resolvable:$true] %s376_s24 }
 0x111   :  { %s554_s25 = scalar_lea.vmem %s377_s24, 128  ;;  %p559_p9 = scmp.lt.s32.totalorder %s377_s24, %s377_s24 }
 0x112   :  { %v364_v3 = vmul.f32 %v353_v48, %v348_v1  ;;  %p555_p8 = scmp.ne.s32.totalorder %s377_s24, %s554_s25  ;;  %p560_p10 = scmp.lt.s32.totalorder %s554_s25, %s554_s25 }
 0x114   :  { %v366_v4 = vadd.f32 %v365_v2, %v364_v3  ;;  %p561_p11 = por %p560_p10, %p559_p9 }
 0x116   :  { %368 = vst.msk [vmem:[#allocation2] sm:$0xff] %vm367_vm2, %v366_v4  ;;  %p562_p12 = pnand %p561_p11, %p555_p8 }
 0x118   :  { %565 = shalt.err (!%p562_p12)
}
 0x119   :  { %s566_s3 = scalar_lea.hbm %s725_s6, 128 }
 0x11a   :  { %p567_p13 = scmp.ne.s32.totalorder %s725_s6, %s566_s3  ;;  %p570_p0 = scmp.lt.u32.totalorder %s566_s3, %s725_s6 }
 0x11c   :  { %p572_p1 = pnand %p570_p0, %p567_p13 }
 0x11e   :  { %575 = shalt.err (!%p572_p1)
}
 0x11f   :  { %379 = dma.vmem_to_hbm [thread:$0]  %s377_s24, 128, %s725_s6, [#allocation3]  }
 0x120   :  { %576 = dma.done.wait [#allocation3], 128  }
 0x121   :  { %577 = vsyncadd [#allocation3], 4294967168 }
 0x122   :  { %578 = dma.done.wait [#allocation5], 128  }
 0x123   :  { %579 = vsyncadd [#allocation5], 4294967168 }
 0x124   :  { %396 = vsyncpa [#allocation3], 1 }
 0x125   :  { %397 = vsyncpa [#allocation5], 1 }

</bundles_post_ra>
